<compile_context>
chip_gen: v7x
topology: tpu7x:2x2x1
jax: 0.10.0
libtpu: 0.0.40
codegen_flags: <defaults>
</compile_context>

<pallas_src>
import math

import jax
import jax.numpy as jnp
from jax.experimental import pallas as pl
from jax.experimental.pallas import tpu as pltpu


def _token_embedding_kernel(x_ref, w_ref, o_ref):
    # x_ref: (Bt, L, C)   w_ref: (3C, Dp)   o_ref: (Bt, L, Dp)
    x = x_ref[...]
    bt, L, C = x.shape

    # Circular padding of 1 + kernel size 3  <=>
    #   out[t] = x[(t-1) mod L] @ W0 + x[t] @ W1 + x[(t+1) mod L] @ W2   (per batch row)
    x_prev = jnp.roll(x, 1, axis=1)    # x_prev[:, t] = x[:, (t-1) % L]
    x_next = jnp.roll(x, -1, axis=1)   # x_next[:, t] = x[:, (t+1) % L]

    # Fuse the three taps into ONE MXU matmul with K = 3C.
    x3 = jnp.concatenate([x_prev, x, x_next], axis=-1)       # (Bt, L, 3C)
    x3 = x3.reshape(bt * L, 3 * C)                            # (Bt*L, 3C)

    acc = jnp.dot(x3, w_ref[...], preferred_element_type=jnp.float32)  # (Bt*L, Dp) f32
    # Single dot -> single store epilogue (no acc += chains).
    o_ref[...] = acc.reshape(bt, L, -1).astype(o_ref.dtype)


def _pick_batch_tile(B, target):
    """Batch tile that (a) divides B exactly and (b) leaves >=2 grid steps when B >= 2,
    so on v7x both TensorCores get work."""
    bt = max(1, min(target, B // 2 if B >= 2 else 1))
    while B % bt:
        bt -= 1
    return bt


def token_embedding(x, weight, *, bt_target=8, compute_dtype=None):
    """Circular Conv1d(k=3, padding=1, padding_mode='circular', bias=False), channel-last.

    x       : (B, L, c_in)
    weight  : (3, c_in, d_model)   (torch weight (d_model, c_in, 3) transposed)
    returns : (B, L, d_model); dtype = compute_dtype if given else x.dtype.
    """
    B, L, C = x.shape
    K, Cw, D = weight.shape
    assert K == 3 and Cw == C, "weight must be (3, c_in, d_model)"

    out_dtype = compute_dtype if compute_dtype is not None else x.dtype
    if compute_dtype is not None:
        # bf16 I/O roughly halves HBM traffic on this memory-bound kernel;
        # accumulation stays f32 via preferred_element_type in the kernel.
        x = x.astype(compute_dtype)
        weight = weight.astype(compute_dtype)

    # Fused tap weight: (3, C, D) -> (3C, D); row blocks [W0; W1; W2] match the
    # in-kernel concat order [x_prev, x, x_next].
    w2d = weight.reshape(3 * C, D)

    # Lane-dense output: pad d_model up to a multiple of 128, slice back afterwards.
    Dp = pl.cdiv(D, 128) * 128
    if Dp != D:
        w2d = jnp.pad(w2d, ((0, 0), (0, Dp - D)))

    bt = _pick_batch_tile(B, bt_target)

    # VMEM note: per step the pipeline double-buffers roughly
    #   2*(bt*L*C + bt*L*Dp)*bytes + 3C*Dp*bytes (+ f32 dot result),
    # which for bt_target=8 and typical L/d_model stays far below the 32 MiB default
    # scoped limit on v6e and the smaller 64 MiB VMEM of v7x; shrink bt_target or raise
    # vmem_limit_bytes for very large L*d_model tiles.
    out = pl.pallas_call(
        _token_embedding_kernel,
        out_shape=jax.ShapeDtypeStruct((B, L, Dp), out_dtype),
        grid_spec=pltpu.PrefetchScalarGridSpec(
            num_scalar_prefetch=0,
            grid=(B // bt,),
            in_specs=[
                # bt batches per step -> M = bt*L MXU rows per matmul, large DMAs.
                pl.BlockSpec((bt, L, C), lambda b: (b, 0, 0)),
                # Grid-invariant weight; constant index_map keeps it resident.
                pl.BlockSpec((3 * C, Dp), lambda b: (0, 0)),
            ],
            out_specs=pl.BlockSpec((bt, L, Dp), lambda b: (b, 0, 0)),
        ),
        compiler_params=pltpu.CompilerParams(
            dimension_semantics=("parallel",),
        ),
    )(x, w2d)

    return out[..., :D] if Dp != D else out


def init_conv_weight(key, c_in, d_model, kernel_size=3):
    """kaiming_normal_(mode='fan_in', nonlinearity='leaky_relu') equivalent.

    torch weight shape: (d_model, c_in, kernel_size); returned transposed to
    (kernel_size, c_in, d_model) for the channel-last kernel.
    """
    fan_in = c_in * kernel_size
    gain = math.sqrt(2.0)  # leaky_relu with default negative_slope=0
    std = gain / math.sqrt(fan_in)
    w_torch = std * jax.random.normal(key, (d_model, c_in, kernel_size), dtype=jnp.float32)
    return jnp.transpose(w_torch, (2, 1, 0))  # (k, c_in, d_model)


def reference(x, weight):
    """Pure-JAX reference of the circular conv (for correctness check)."""
    x_prev = jnp.roll(x, 1, axis=1)
    x_next = jnp.roll(x, -1, axis=1)
    return (jnp.einsum("blc,cd->bld", x_prev, weight[0])
            + jnp.einsum("blc,cd->bld", x, weight[1])
            + jnp.einsum("blc,cd->bld", x_next, weight[2]))


if __name__ == "__main__":
    # Small but representative: batch=4, seq=16, c_in=4, d_model=128 (lane-dense output).
    B, L, C_IN, D_MODEL = 4, 16, 4, 128

    key = jax.random.PRNGKey(0)
    kx, kw = jax.random.split(key)
    x = jax.random.normal(kx, (B, L, C_IN), dtype=jnp.float32)
    w = init_conv_weight(kw, C_IN, D_MODEL, kernel_size=3)

    ref = reference(x, w)

    # f32 path: matches the PyTorch module's numerics.
    out = jax.block_until_ready(token_embedding(x, w))
    assert out.shape == (B, L, D_MODEL)
    assert jnp.allclose(out, ref, atol=1e-5, rtol=1e-5)

    # Optional bf16 I/O path (memory-bound win); f32 accumulation, looser tolerance.
    out_bf16 = jax.block_until_ready(token_embedding(x, w, compute_dtype=jnp.bfloat16))
    assert out_bf16.shape == (B, L, D_MODEL)
    assert jnp.allclose(out_bf16.astype(jnp.float32), ref, atol=7e-2, rtol=7e-2)

    print("KERNEL_OK")
</pallas_src>

<mosaic_0001>
module attributes {stable_mosaic.version = 11 : i64} {
  func.func @_token_embedding_kernel(%arg0: i32, %arg1: memref<2x16x4xf32, #tpu.memory_space<vmem>>, %arg2: memref<12x128xf32, #tpu.memory_space<vmem>>, %arg3: memref<2x16x128xf32, #tpu.memory_space<vmem>>) attributes {dimension_semantics = [#tpu.dimension_semantics<parallel>], iteration_bounds = array<i64: 2>, scalar_prefetch = 0 : i64, scratch_operands = 0 : i64, tpu.core_type = #tpu.core_type<tc>, window_params = [{transform_indices = @transform_0, window_bounds = array<i64: 2, 16, 4>}, {pipeline_mode = #tpu.pipeline_mode<synchronous>, transform_indices = @transform_1, window_bounds = array<i64: 12, 128>}, {transform_indices = @transform_2, window_bounds = array<i64: 2, 16, 128>}]} {
    %c0 = arith.constant 0 : index
    %c0_0 = arith.constant 0 : index
    %c0_1 = arith.constant 0 : index
    %0 = vector.load %arg1[%c0, %c0_0, %c0_1] : memref<2x16x4xf32, #tpu.memory_space<vmem>>, vector<2x16x4xf32>
    %1 = vector.extract_strided_slice %0 {offsets = [0, 15, 0], sizes = [2, 1, 4], strides = [1, 1, 1]} : vector<2x16x4xf32> to vector<2x1x4xf32>
    %2 = vector.extract_strided_slice %0 {offsets = [0, 0, 0], sizes = [2, 15, 4], strides = [1, 1, 1]} : vector<2x16x4xf32> to vector<2x15x4xf32>
    %3 = tpu.concatenate %1, %2 in 1 : vector<2x1x4xf32>, vector<2x15x4xf32> -> vector<2x16x4xf32>
    %4 = vector.extract_strided_slice %0 {offsets = [0, 1, 0], sizes = [2, 15, 4], strides = [1, 1, 1]} : vector<2x16x4xf32> to vector<2x15x4xf32>
    %5 = vector.extract_strided_slice %0 {offsets = [0, 0, 0], sizes = [2, 1, 4], strides = [1, 1, 1]} : vector<2x16x4xf32> to vector<2x1x4xf32>
    %6 = tpu.concatenate %4, %5 in 1 : vector<2x15x4xf32>, vector<2x1x4xf32> -> vector<2x16x4xf32>
    %7 = tpu.concatenate %3, %0, %6 in 2 : vector<2x16x4xf32>, vector<2x16x4xf32>, vector<2x16x4xf32> -> vector<2x16x12xf32>
    %8 = vector.shape_cast %7 : vector<2x16x12xf32> to vector<32x12xf32>
    %c0_2 = arith.constant 0 : index
    %c0_3 = arith.constant 0 : index
    %9 = vector.load %arg2[%c0_2, %c0_3] : memref<12x128xf32, #tpu.memory_space<vmem>>, vector<12x128xf32>
    %cst = arith.constant dense<0.000000e+00> : vector<32x128xf32>
    %10 = tpu.matmul %8, %9, %cst {dimension_numbers = #tpu.dot_dimension_numbers<[1], [0], [0], [1], [0, 0, 1, 1], [], []>} : vector<32x12xf32>, vector<12x128xf32>, vector<32x128xf32> -> vector<32x128xf32>
    %11 = vector.shape_cast %10 : vector<32x128xf32> to vector<2x16x128xf32>
    %c0_4 = arith.constant 0 : index
    %c0_5 = arith.constant 0 : index
    %c0_6 = arith.constant 0 : index
    %12 = vector.load %arg3[%c0_4, %c0_5, %c0_6] : memref<2x16x128xf32, #tpu.memory_space<vmem>>, vector<2x16x128xf32>
    tpu.vector_store %arg3[%c0_4, %c0_5, %c0_6], %11 {strides = array<i32>} : memref<2x16x128xf32, #tpu.memory_space<vmem>>, vector<2x16x128xf32>,
    return
  }
  func.func @transform_0(%arg0: i32) -> (i32, i32, i32) {
    %c0_i32 = arith.constant 0 : i32
    %c0_i32_0 = arith.constant 0 : i32
    %c0_i32_1 = arith.constant 0 : i32
    return %arg0, %c0_i32, %c0_i32_0 : i32, i32, i32
  }
  func.func @transform_1(%arg0: i32) -> (i32, i32) {
    %c0_i32 = arith.constant 0 : i32
    %c0_i32_0 = arith.constant 0 : i32
    %c0_i32_1 = arith.constant 0 : i32
    return %c0_i32, %c0_i32_0 : i32, i32
  }
  func.func @transform_2(%arg0: i32) -> (i32, i32, i32) {
    %c0_i32 = arith.constant 0 : i32
    %c0_i32_0 = arith.constant 0 : i32
    %c0_i32_1 = arith.constant 0 : i32
    return %arg0, %c0_i32, %c0_i32_0 : i32, i32, i32
  }
}

</mosaic_0001>

<bundles_post_ra>
// kernel: tpu_custom_call.1
= control target key start
LH: loop header
LB: loop body
LE: loop exit
PB: predicated region body
PF: predicated region fallthrough
CT: control target
= control target key end

     0   :  { %7 = vsyncpa [#allocation3], 0  ;;  %s699_s0 = inlined_call_operand.vmem [shape: f32[4,16,4], index: 0, kind: input, shape index: {}]   ;;  %s700_s1 = inlined_call_operand.vmem [shape: f32[12,128], index: 1, kind: input, shape index: {}]   ;;  %s701_s2 = inlined_call_operand.hbm [shape: f32[4,16,128], index: 2, kind: output, shape index: {}]  }
   0x1   :  { %9 = vsyncpa [#allocation3 + $0x1], 0  ;;  %s578_s9 = smov 0   ;;  %s580_s10 = smov 0  }
   0x2   :  { %s582_s11 = smov 0   ;;  %s584_s12 = smov 0  }
   0x3 LB: > { %s599_s13 = sadd.s32 4294967295, %s556_s12   ;;  %s405_s14 = sadd.s32 4294967294, %s556_s12   ;;  %s556_s12 = sphi %s584_s12, %s707_s12   ;;  %s552_s11 = sphi %s582_s11, %s706_s11   ;;  %s548_s10 = sphi %s580_s10, %s705_s10   ;;  %s544_s9 = sphi %s578_s9, %s704_s9  }
   0x4   : > { %s603_s15 = sadd.s32 1, %s556_s12   ;;  %s69_s16 = sadd.s32 1, %s552_s11 }
   0x5   : > { %s66_s17 = ssub.s32 %s556_s12, %s603_s15  ;;  %p79_p0 = scmp.ne.s32.totalorder %s552_s11, %s548_s10 }
   0x6   : > { %p67_p1 = scmp.eq.s32.totalorder %s66_s17, 0  ;;  %p80_p2 = scmp.eq.s32.totalorder %s599_s13, 1 }
   0x7   : > { %p85_p3 = scmp.ne.s32.totalorder %s548_s10, %s544_s9  ;;  %p86_p4 = scmp.eq.s32.totalorder %s405_s14, 1 }
   0x8   : > { %s614_s18 = scalar_select %p67_p1, %s552_s11, %s69_s16  }
   0x9   : > { %p616_p5 = por %p80_p2, %p79_p0  ;;  %p620_p6 = por %p86_p4, %p85_p3 }
   0xa   : > { %p408_p7 = scmp.ge.s32.totalorder %s556_s12, 1  ;;  %p117_p8 = scmp.lt.s32.totalorder %s556_s12, 3 }
   0xc   : > { %p118_p9 = pnand %p408_p7, %p117_p8 }
   0xd   : > { %s410_s21 = sshll.u32 (!%p118_p9), %s599_s13, 1  ;;  %v220_v0 = vld [vmem:[%s700_s1] sm:$0xff] (!%p118_p9)  ;;  %v221_v1 = vld [vmem:[%s700_s1 + $0x8] sm:$0xf] (!%p118_p9)  ;;  %vm235_vm0 = vcmask (!%p118_p9), 1043456   ;;  %vm558_vm1 = vmmov (!%p118_p9), 1  }
   0xe   : > { %121 = sbr.rel (%p118_p9) target bundleno = 381 (0x17d), region = 28  ;;  %p141_p10 = scmp.lt.s32.totalorder (!%p118_p9), %s410_s21, 3  ;;  %v443_v2 = vpack.c.bf16 (!%p118_p9), %v221_v1, %v220_v0  ;;  %vm444_vm2 = vmpackc.low (!%p118_p9), %vm235_vm0, %vm558_vm1  ;;  %vm160_vm3 = vcmask (!%p118_p9), 1040384   ;;  %vm171_vm4 = vcmask (!%p118_p9), 1046528   ;;  %vm210_vm5 = vcmask (!%p118_p9), 31744  }
   0xf   : > { %s559_s30 = smov (!%p118_p9), 4   ;;  %s560_s3 = smov (!%p118_p9), 8   ;;  %vm215_vm6 = vcmask (!%p118_p9), 64512   ;;  %vm222_vm7 = vcmask (!%p118_p9), 97280  }
  0x10   : > { %445 = vmatprep.subr.msk.bf16.mxu0 (!%p118_p9), %vm444_vm2, %v443_v2  ;;  %449 = vmatprep.subr.msk.bf16.mxu1 (!%p118_p9), %vm444_vm2, %v443_v2  ;;  %s137_s4 = sand.u32 (!%p118_p9), 1, %s548_s10   ;;  %s426_s8 = sshll.u32 (!%p118_p9), %s599_s13, 9 }
  0x11   : > { %448 = vmatpush3.bf16.msk.msra.mxu0 (!%p118_p9), %vm444_vm2, %v443_v2  ;;  %450 = vmatpush3.bf16.msk.msra.mxu1 (!%p118_p9), %vm444_vm2, %v443_v2  ;;  %s409_s5 = sshll.u32 (!%p118_p9), %s137_s4, 5  ;;  %s655_s17 = scalar_lea.hbm (!%p118_p9), %s701_s2, %s426_s8 }
  0x12   : > { %s139_s6 = scalar_lea.vmem (!%p118_p9), [#allocation2], %s409_s5  ;;  %s561_s22 = smov (!%p118_p9), [#allocation2]  }
  0x13   : > { %s343_s7 = sshll.u32 (!%p118_p9), %s139_s6, 4  ;;  %s498_s23 = sshll.u32 (!%p118_p9), %s561_s22, 4  ;;  %s650_s7 = int_to_ptr.vmem [resolvable:$true] %s343_s7  ;;  %s499_s23 = int_to_ptr.vmem [resolvable:$false] %s498_s23 }
  0x14   : > { %s494_s13 = scalar_lea.vmem (!%p118_p9), %s650_s7, 512  ;;  %s500_s24 = scalar_lea.vmem (!%p118_p9), %s499_s23, 1024 }
  0x15   : > { %s709_s21 = smov (!%p141_p10, %s410_s21), 3  ;;  %p495_p11 = scmp.ne.s32.totalorder %s650_s7, %s494_s13 }
  0x16   : > { %s424_s26 = sshll.u32 %s709_s21, 4  ;;  %s657_s21 = scalar_lea.sflag [#allocation3], %s137_s4 }
  0x17   : > { %s145_s29 = scalar_lea.vmem %s699_s0, %s424_s26  ;;  %p496_p12 = pnand %p495_p11, %p616_p5 }
  0x18   : > { %v149_v3 = vld [vmem:[%s145_s29 + $0x8] sm:$0xff]  ;;  %v148_v4 = vld [vmem:[%s145_s29] sm:$0xff]  ;;  %v151_v5 = vld [vmem:[%s145_s29 + $0x18] sm:$0xff]  ;;  %p501_p0 = scmp.lt.s32.totalorder %s650_s7, %s499_s23  ;;  %p502_p1 = scmp.lt.s32.totalorder %s500_s24, %s494_s13 }
  0x19   : > { %186 = vrot.lane.b32.xlu1 %v149_v3, %s559_s30  ;;  %v154_v6 = vrot.slane %v149_v3, 7  ;;  %v173_v7 = vrot.slane %v149_v3, 1  ;;  %184 = vrot.lane.b32.xlu0 %v148_v4, %s559_s30  ;;  %v161_v8 = vrot.slane %v148_v4, 7  ;;  %v172_v9 = vrot.slane %v148_v4, 1  ;;  %v150_v10 = vld [vmem:[%s145_s29 + $0x10] sm:$0xff]  ;;  %p497_p13 = pneg %p496_p12 }
  0x1a   : > { %v155_v11 = vrot.slane %v151_v5, 7  ;;  %v176_v12 = vrot.slane %v151_v5, 1  ;;  %v163_v13 = vrot.slane %v150_v10, 7  ;;  %v175_v14 = vrot.slane %v150_v10, 1  ;;  %p503_p2 = por %p502_p1, %p501_p0 }
  0x1b   : > { %v162_v15 = vsel %vm160_vm3, %v161_v8, %v154_v6  ;;  %v169_v16 = vsel %vm160_vm3, %v154_v6, %v161_v8  ;;  %v174_v20 = vsel %vm171_vm4, %v172_v9, %v173_v7  ;;  %v182_v22 = vsel %vm171_vm4, %v173_v7, %v172_v9 }
  0x1c   : > { %v164_v17 = vsel %vm160_vm3, %v163_v13, %v155_v11  ;;  %v170_v18 = vsel %vm160_vm3, %v155_v11, %v163_v13  ;;  %v177_v19 = vsel %vm171_vm4, %v175_v14, %v176_v12  ;;  %v183_v21 = vsel %vm171_vm4, %v176_v12, %v175_v14  ;;  %p504_p3 = pnand %p503_p2, %p497_p13 }
  0x1d   : > { %190 = vrot.lane.b32.xlu1 %v151_v5, %s559_s30  ;;  %188 = vrot.lane.b32.xlu0 %v150_v10, %s559_s30 }
  0x21   : > { %202 = vrot.lane.b32.xlu1 %v177_v19, %s560_s3  ;;  %198 = vrot.lane.b32.xlu0 %v174_v20, %s560_s3 }
  0x25   : > { %204 = vrot.lane.b32.xlu1 %v183_v21, %s560_s3  ;;  %200 = vrot.lane.b32.xlu0 %v182_v22, %s560_s3 }
  0x8b   : > { %v187_v23 = vpop.permute.xlu1 %186  ;;  %v185_v24 = vpop.permute.xlu0 %184 }
  0x8c   : > { %v211_v27 = vsel %vm210_vm5, %v169_v16, %v185_v24  ;;  %v212_v33 = vsel %vm210_vm5, %v162_v15, %v187_v23 }
  0x8f   : > { %v191_v25 = vpop.permute.xlu1 %190  ;;  %v189_v26 = vpop.permute.xlu0 %188 }
  0x90   : > { %v213_v28 = vsel %vm210_vm5, %v170_v18, %v189_v26  ;;  %v214_v34 = vsel %vm210_vm5, %v164_v17, %v191_v25 }
  0x93   : > { %v203_v29 = vpop.permute.xlu1 %202  ;;  %v199_v30 = vpop.permute.xlu0 %198 }
  0x94   : > { %v216_v31 = vsel %vm215_vm6, %v211_v27, %v199_v30  ;;  %v218_v32 = vsel %vm215_vm6, %v213_v28, %v203_v29 }
  0x95   : > { %437 = vmatprep.mubr.msk.f32.mxu0 %vm222_vm7, %v216_v31  ;;  %440 = vmatprep.mubr.msk.f32.mxu1 %vm222_vm7, %v218_v32 }
  0x97   : > { %v205_v35 = vpop.permute.xlu1 %204  ;;  %v201_v36 = vpop.permute.xlu0 %200 }
  0x98   : > { %v219_v37 = vsel %vm215_vm6, %v214_v34, %v205_v35  ;;  %v217_v38 = vsel %vm215_vm6, %v212_v33, %v201_v36 }
  0x99   : > { %438 = vmatmul.mubr.msk.f32.vlgmr.msra.gmra.mrb[0].mxu0 %vm222_vm7, %v217_v38  ;;  %441 = vmatmul.mubr.msk.f32.vlgmr.msra.gmra.mrb[0].mxu1 %vm222_vm7, %v219_v37 }
 0x16c   : > { %v439_v39 = vpop.f32.mrb[0].mxu0  ;;  %v442_v40 = vpop.f32.mrb[0].mxu1 }
 0x16d   : > { %325 = vst [vmem:[%s139_s6 + $0x8] sm:$0xff] %v439_v39  ;;  %327 = vst [vmem:[%s139_s6 + $0x18] sm:$0xff] %v442_v40  ;;  %v305_v41 = vpop.f32.mrb[1].mxu0  ;;  %v315_v42 = vpop.f32.mrb[1].mxu1 }
 0x16e   : > { %324 = vst [vmem:[%s139_s6] sm:$0xff] %v305_v41  ;;  %326 = vst [vmem:[%s139_s6 + $0x10] sm:$0xff] %v315_v42 }
 0x16f   : > { %507 = shalt.err (!%p504_p3)
}
 0x170   : > { %s508_s25 = scalar_lea.hbm %s655_s17, 512  ;;  %s512_s28 = scalar_lea.hbm %s701_s2, 1024 }
 0x171   : > { %p509_p4 = scmp.ne.s32.totalorder %s655_s17, %s508_s25  ;;  %p513_p9 = scmp.lt.u32.totalorder %s655_s17, %s701_s2 }
 0x172   : > { %p514_p10 = scmp.lt.u32.totalorder %s512_s28, %s508_s25  ;;  %p516_p12 = scmp.lt.u32.totalorder %s508_s25, %s655_s17 }
 0x173   : > { %p510_p7 = pnand %p509_p4, %p616_p5 }
 0x174   : > { %p515_p11 = por %p514_p10, %p513_p9 }
 0x175   : > { %p511_p8 = pneg %p510_p7 }
 0x176   : > { %p517_p13 = por %p516_p12, %p515_p11 }
 0x178   : > { %p518_p0 = pnand %p517_p13, %p511_p8 }
 0x17a   : > { %521 = shalt.err (!%p518_p0)
}
 0x17b   : > { %s562_s4 = smov 128  }
 0x17c   : > { %451 = dma.vmem_to_hbm [thread:$0]  (%p616_p5), %s650_s7, 512, %s655_s17, %s657_s21, %s562_s4, %s562_s4, %s560_s3  }
 0x17d PF: > { %p457_p1 = scmp.ge.s32.totalorder %s556_s12, 2  ;;  %s358_s5 = sand.u32 1, %s544_s9  }
 0x17e   : > { %s359_s6 = scalar_lea.sflag [#allocation3], %s358_s5 }
 0x17f   : > { %p454_p2 = pnand %p457_p1, %p620_p6 }
 0x181   : > { %539 = dma.done.wait (!%p454_p2), %s359_s6, 512  }
 0x182   : > { %541 = vsyncadd (!%p454_p2), %s359_s6, 4294966784  ;;  %p12_p3 = scmp.ge.s32.totalorder %s603_s15, 4   ;;  %s704_s9 = smov %s548_s10 }
 0x183   : > { %s705_s10 = smov %s552_s11  ;;  %s706_s11 = smov %s614_s18 }
 0x184   : > { %s707_s12 = smov %s603_s15  ;;  %14 = sbr.rel (!%p12_p3) target bundleno = 3 (0x3), region = 63 }
 0x18b   :  { %364 = vsyncpa [#allocation3], 1 }
 0x18c   :  { %366 = vsyncpa [#allocation3 + $0x1], 1 }

</bundles_post_ra>
